<compile_context>
chip_gen: v7x
topology: tpu7x:2x2x1
jax: 0.10.0
libtpu: 0.0.40
codegen_flags: <defaults>
</compile_context>

<pallas_src>
import functools

import jax
import jax.numpy as jnp
from jax.experimental import pallas as pl
from jax.experimental.pallas import tpu as pltpu


# ---------------------------------------------------------------------------
# Fused Pallas kernel: conv3x3 (im2col) + conv1x1(context) + biases + add
# ---------------------------------------------------------------------------
def _cond_conv_kernel(x_ref, ctx_ref, w_ref, wc_ref, b_ref, mask_ref,
                      o_ref, xpf_ref, pat_ref, *, W):
    """One batch element per grid step.

    x_ref    : (1, Cin, H*W)          input, NCHW with spatial flattened
    ctx_ref  : (1, Cc,  H*W)          context, same flattening
    w_ref    : (Cout, 9*Cin)          3x3 weights, K ordered (dy, dx, ci)
    wc_ref   : (Cout, Cc)             1x1 context-conv weights
    b_ref    : (Cout, 1)              fused bias (conv bias + context bias)
    mask_ref : (3, H*W)               0/1 column-validity mask per dx tap
    o_ref    : (1, Cout, H*W)
    xpf_ref  : VMEM (Cin, H*W + 2*(W+1))   flattened, vertically padded image
    pat_ref  : VMEM (9*Cin, H*W)           im2col patches
    """
    Cin = x_ref.shape[1]
    HW = x_ref.shape[2]
    pad = W + 1

    # Flattened, vertically zero-padded image: [W+1 zeros | x | W+1 zeros].
    xpf_ref[:, 0:pad] = jnp.zeros((Cin, pad), jnp.float32)
    xpf_ref[:, pad + HW:pad + HW + pad] = jnp.zeros((Cin, pad), jnp.float32)
    xpf_ref[:, pad:pad + HW] = x_ref[0]

    # im2col: row (dy*3+dx)*Cin + ci of pat_ref holds x[ci, h+dy-1, w+dx-1]
    # for every output pixel p = h*W + w.  In the flattened padded buffer that
    # is the contiguous window starting at dy*W + dx; the column mask zeros the
    # taps that would wrap around a row edge (horizontal padding).
    for dy in range(3):
        for dx in range(3):
            start = dy * W + dx
            window = xpf_ref[:, start:start + HW]            # (Cin, HW)
            window = window * mask_ref[dx:dx + 1, :]          # (1, HW) bcast
            r0 = (dy * 3 + dx) * Cin
            pat_ref[r0:r0 + Cin, :] = window

    # One MXU contraction for the 3x3 conv, one for the 1x1 context conv,
    # fused bias and residual add; result is already (Cout, H*W) == NCHW-flat.
    acc = jnp.dot(w_ref[...], pat_ref[...],
                  preferred_element_type=jnp.float32)         # (Cout, HW)
    acc = acc + jnp.dot(wc_ref[...], ctx_ref[0],
                        preferred_element_type=jnp.float32)   # context weights
    acc = acc + b_ref[...]                                    # (Cout, 1) bcast
    o_ref[0] = acc.astype(o_ref.dtype)


# ---------------------------------------------------------------------------
# Wrapper
# ---------------------------------------------------------------------------
def conditional_conv2d(x, context, params):
    """x: (N, Cin, H, W) NCHW; context: (N, Cc, H, W) NCHW. Returns NCHW."""
    N, Cin, H, W = x.shape
    Nc, Cc, Hc, Wc = context.shape
    w_conv = params["w_conv"]          # (Cout, Cin, 3, 3) OIHW
    b_conv = params["b_conv"]          # (Cout,)
    w_ctx = params["w_ctx"]            # (Cin*k*k, Cc, 1, 1) OIHW
    b_ctx = params["b_ctx"]            # (Cin*k*k,)
    Cout = w_conv.shape[0]
    HW = H * W

    # TODO(synk): stride != 1 not implemented (module default stride=1).
    # The PyTorch .view(B,-1,H,W) must be an identity channel mapping for the
    # fused add; that is the standard TEANet usage (same spatial size and
    # in_channels*k*k == out_channels), enforced here.
    assert Nc == N and (Hc, Wc) == (H, W) and w_ctx.shape[0] == Cout

    # 3x3 weights as an im2col matrix with K ordered (dy, dx, ci).
    w_mat = jnp.transpose(w_conv, (0, 2, 3, 1)).reshape(Cout, 9 * Cin)
    wc_mat = w_ctx.reshape(Cout, Cc)
    bias = (b_conv + b_ctx).reshape(Cout, 1)      # both biases fused

    # 0/1 column mask per horizontal tap dx in {0,1,2} (offset dx-1).
    w_pos = jnp.arange(HW, dtype=jnp.int32) % W
    colmask = jnp.stack([(w_pos >= 1).astype(jnp.float32),
                         jnp.ones((HW,), jnp.float32),
                         (w_pos <= W - 2).astype(jnp.float32)], axis=0)

    # Layout-preserving (free) reshapes: NCHW -> (N, C, H*W).
    x_flat = x.reshape(N, Cin, HW).astype(jnp.float32)
    ctx_flat = context.reshape(N, Cc, HW).astype(jnp.float32)

    kernel = functools.partial(_cond_conv_kernel, W=W)
    out = pl.pallas_call(
        kernel,
        out_shape=jax.ShapeDtypeStruct((N, Cout, HW), jnp.float32),
        grid=(N,),
        in_specs=[
            pl.BlockSpec((1, Cin, HW), lambda n: (n, 0, 0)),
            pl.BlockSpec((1, Cc, HW), lambda n: (n, 0, 0)),
            pl.BlockSpec((Cout, 9 * Cin), lambda n: (0, 0)),
            pl.BlockSpec((Cout, Cc), lambda n: (0, 0)),
            pl.BlockSpec((Cout, 1), lambda n: (0, 0)),
            pl.BlockSpec((3, HW), lambda n: (0, 0)),
        ],
        out_specs=pl.BlockSpec((1, Cout, HW), lambda n: (n, 0, 0)),
        scratch_shapes=[
            pltpu.VMEM((Cin, HW + 2 * (W + 1)), jnp.float32),  # padded image
            pltpu.VMEM((9 * Cin, HW), jnp.float32),            # im2col patches
        ],
        compiler_params=pltpu.CompilerParams(
            dimension_semantics=("parallel",)),
    )(x_flat, ctx_flat, w_mat, wc_mat, bias, colmask)

    # Free reshape back to NCHW (same memory layout).
    return out.reshape(N, Cout, H, W)


# ---------------------------------------------------------------------------
# Pure-JAX reference (mirrors the PyTorch forward exactly) + params
# ---------------------------------------------------------------------------
def conditional_conv2d_ref(x, context, params):
    ctx_w = jax.lax.conv_general_dilated(
        context, params["w_ctx"], window_strides=(1, 1), padding="VALID",
        dimension_numbers=("NCHW", "OIHW", "NCHW"))
    ctx_w = ctx_w + params["b_ctx"][None, :, None, None]
    ctx_w = ctx_w.reshape(ctx_w.shape[0], -1, x.shape[2], x.shape[3])
    out = jax.lax.conv_general_dilated(
        x, params["w_conv"], window_strides=(1, 1), padding=((1, 1), (1, 1)),
        dimension_numbers=("NCHW", "OIHW", "NCHW"))
    out = out + params["b_conv"][None, :, None, None]
    return out + ctx_w


def init_params(key, in_channels, out_channels, context_channels):
    k1, k2, k3, k4 = jax.random.split(key, 4)
    return {
        "w_conv": 0.1 * jax.random.normal(
            k1, (out_channels, in_channels, 3, 3), jnp.float32),
        "b_conv": 0.01 * jax.random.normal(k2, (out_channels,), jnp.float32),
        # context_conv: 1x1, context_channels -> in_channels*k*k (== Cout here)
        "w_ctx": 0.1 * jax.random.normal(
            k3, (out_channels, context_channels, 1, 1), jnp.float32),
        "b_ctx": 0.01 * jax.random.normal(k4, (out_channels,), jnp.float32),
    }


if __name__ == "__main__":
    key = jax.random.PRNGKey(0)
    kx, kc, kp = jax.random.split(key, 3)

    # ConditionalConv2d(in_channels=4, out_channels=16, kernel_size=2,
    #                   context_channels=8, stride=1):
    # in_channels * kernel_size**2 == out_channels, so the PyTorch .view()
    # is an identity channel mapping and the residual add is well defined.
    N, Cin, Cc, H, W = 2, 4, 8, 16, 16
    ksz = 2
    Cout = Cin * ksz * ksz          # 16

    x = jax.random.normal(kx, (N, Cin, H, W), jnp.float32)
    context = jax.random.normal(kc, (N, Cc, H, W), jnp.float32)
    params = init_params(kp, Cin, Cout, Cc)

    fn = jax.jit(conditional_conv2d)
    out = jax.block_until_ready(fn(x, context, params))

    assert out.shape == (N, Cout, H, W), out.shape
    assert bool(jnp.all(jnp.isfinite(out)))

    ref = conditional_conv2d_ref(x, context, params)
    err = float(jnp.max(jnp.abs(out - ref)))
    assert err < 5e-2, f"max abs error vs reference: {err}"

    print("KERNEL_OK")
</pallas_src>

<mosaic_0001>
module attributes {stable_mosaic.version = 11 : i64} {
  func.func @_cond_conv_kernel(%arg0: i32, %arg1: memref<1x4x256xf32, #tpu.memory_space<vmem>>, %arg2: memref<1x8x256xf32, #tpu.memory_space<vmem>>, %arg3: memref<16x36xf32, #tpu.memory_space<vmem>>, %arg4: memref<16x8xf32, #tpu.memory_space<vmem>>, %arg5: memref<16x1xf32, #tpu.memory_space<vmem>>, %arg6: memref<3x256xf32, #tpu.memory_space<vmem>>, %arg7: memref<1x16x256xf32, #tpu.memory_space<vmem>>, %arg8: memref<4x290xf32, #tpu.memory_space<vmem>>, %arg9: memref<36x256xf32, #tpu.memory_space<vmem>>) attributes {dimension_semantics = [#tpu.dimension_semantics<parallel>], iteration_bounds = array<i64: 2>, scalar_prefetch = 0 : i64, scratch_operands = 2 : i64, tpu.core_type = #tpu.core_type<tc>, window_params = [{transform_indices = @transform_0, window_bounds = array<i64: 1, 4, 256>}, {transform_indices = @transform_1, window_bounds = array<i64: 1, 8, 256>}, {pipeline_mode = #tpu.pipeline_mode<synchronous>, transform_indices = @transform_2, window_bounds = array<i64: 16, 36>}, {pipeline_mode = #tpu.pipeline_mode<synchronous>, transform_indices = @transform_3, window_bounds = array<i64: 16, 8>}, {pipeline_mode = #tpu.pipeline_mode<synchronous>, transform_indices = @transform_4, window_bounds = array<i64: 16, 1>}, {pipeline_mode = #tpu.pipeline_mode<synchronous>, transform_indices = @transform_5, window_bounds = array<i64: 3, 256>}, {transform_indices = @transform_6, window_bounds = array<i64: 1, 16, 256>}]} {
    %cst = arith.constant 0.000000e+00 : f32
    %0 = vector.broadcast %cst : f32 to vector<4x17xf32>
    %c0 = arith.constant 0 : index
    %c0_0 = arith.constant 0 : index
    %1 = vector.load %arg8[%c0, %c0_0] : memref<4x290xf32, #tpu.memory_space<vmem>>, vector<4x17xf32>
    tpu.vector_store %arg8[%c0, %c0_0], %0 {strides = array<i32>} : memref<4x290xf32, #tpu.memory_space<vmem>>, vector<4x17xf32>,
    %cst_1 = arith.constant 0.000000e+00 : f32
    %2 = vector.broadcast %cst_1 : f32 to vector<4x17xf32>
    %c0_2 = arith.constant 0 : index
    %c273 = arith.constant 273 : index
    %3 = vector.load %arg8[%c0_2, %c273] : memref<4x290xf32, #tpu.memory_space<vmem>>, vector<4x17xf32>
    tpu.vector_store %arg8[%c0_2, %c273], %2 {strides = array<i32>} : memref<4x290xf32, #tpu.memory_space<vmem>>, vector<4x17xf32>,
    %c0_3 = arith.constant 0 : index
    %c0_4 = arith.constant 0 : index
    %c0_5 = arith.constant 0 : index
    %4 = vector.load %arg1[%c0_3, %c0_4, %c0_5] : memref<1x4x256xf32, #tpu.memory_space<vmem>>, vector<1x4x256xf32>
    %5 = vector.shape_cast %4 : vector<1x4x256xf32> to vector<4x256xf32>
    %c0_6 = arith.constant 0 : index
    %c17 = arith.constant 17 : index
    %6 = vector.load %arg8[%c0_6, %c17] : memref<4x290xf32, #tpu.memory_space<vmem>>, vector<4x256xf32>
    tpu.vector_store %arg8[%c0_6, %c17], %5 {strides = array<i32>} : memref<4x290xf32, #tpu.memory_space<vmem>>, vector<4x256xf32>,
    %c0_7 = arith.constant 0 : index
    %c0_8 = arith.constant 0 : index
    %7 = vector.load %arg8[%c0_7, %c0_8] : memref<4x290xf32, #tpu.memory_space<vmem>>, vector<4x256xf32>
    %c0_9 = arith.constant 0 : index
    %c0_10 = arith.constant 0 : index
    %8 = vector.load %arg6[%c0_9, %c0_10] : memref<3x256xf32, #tpu.memory_space<vmem>>, vector<1x256xf32>
    %9 = vector.broadcast %8 : vector<1x256xf32> to vector<4x256xf32>
    %10 = arith.mulf %7, %9 : vector<4x256xf32>
    %c0_11 = arith.constant 0 : index
    %c0_12 = arith.constant 0 : index
    %11 = vector.load %arg9[%c0_11, %c0_12] : memref<36x256xf32, #tpu.memory_space<vmem>>, vector<4x256xf32>
    tpu.vector_store %arg9[%c0_11, %c0_12], %10 {strides = array<i32>} : memref<36x256xf32, #tpu.memory_space<vmem>>, vector<4x256xf32>,
    %c0_13 = arith.constant 0 : index
    %c1 = arith.constant 1 : index
    %12 = vector.load %arg8[%c0_13, %c1] : memref<4x290xf32, #tpu.memory_space<vmem>>, vector<4x256xf32>
    %c1_14 = arith.constant 1 : index
    %c0_15 = arith.constant 0 : index
    %13 = vector.load %arg6[%c1_14, %c0_15] : memref<3x256xf32, #tpu.memory_space<vmem>>, vector<1x256xf32>
    %14 = vector.broadcast %13 : vector<1x256xf32> to vector<4x256xf32>
    %15 = arith.mulf %12, %14 : vector<4x256xf32>
    %c4 = arith.constant 4 : index
    %c0_16 = arith.constant 0 : index
    %16 = vector.load %arg9[%c4, %c0_16] : memref<36x256xf32, #tpu.memory_space<vmem>>, vector<4x256xf32>
    tpu.vector_store %arg9[%c4, %c0_16], %15 {strides = array<i32>} : memref<36x256xf32, #tpu.memory_space<vmem>>, vector<4x256xf32>,
    %c0_17 = arith.constant 0 : index
    %c2 = arith.constant 2 : index
    %17 = vector.load %arg8[%c0_17, %c2] : memref<4x290xf32, #tpu.memory_space<vmem>>, vector<4x256xf32>
    %c2_18 = arith.constant 2 : index
    %c0_19 = arith.constant 0 : index
    %18 = vector.load %arg6[%c2_18, %c0_19] : memref<3x256xf32, #tpu.memory_space<vmem>>, vector<1x256xf32>
    %19 = vector.broadcast %18 : vector<1x256xf32> to vector<4x256xf32>
    %20 = arith.mulf %17, %19 : vector<4x256xf32>
    %c8 = arith.constant 8 : index
    %c0_20 = arith.constant 0 : index
    %21 = vector.load %arg9[%c8, %c0_20] : memref<36x256xf32, #tpu.memory_space<vmem>>, vector<4x256xf32>
    tpu.vector_store %arg9[%c8, %c0_20], %20 {strides = array<i32>} : memref<36x256xf32, #tpu.memory_space<vmem>>, vector<4x256xf32>,
    %c0_21 = arith.constant 0 : index
    %c16 = arith.constant 16 : index
    %22 = vector.load %arg8[%c0_21, %c16] : memref<4x290xf32, #tpu.memory_space<vmem>>, vector<4x256xf32>
    %c0_22 = arith.constant 0 : index
    %c0_23 = arith.constant 0 : index
    %23 = vector.load %arg6[%c0_22, %c0_23] : memref<3x256xf32, #tpu.memory_space<vmem>>, vector<1x256xf32>
    %24 = vector.broadcast %23 : vector<1x256xf32> to vector<4x256xf32>
    %25 = arith.mulf %22, %24 : vector<4x256xf32>
    %c12 = arith.constant 12 : index
    %c0_24 = arith.constant 0 : index
    %26 = vector.load %arg9[%c12, %c0_24] : memref<36x256xf32, #tpu.memory_space<vmem>>, vector<4x256xf32>
    tpu.vector_store %arg9[%c12, %c0_24], %25 {strides = array<i32>} : memref<36x256xf32, #tpu.memory_space<vmem>>, vector<4x256xf32>,
    %c0_25 = arith.constant 0 : index
    %c17_26 = arith.constant 17 : index
    %27 = vector.load %arg8[%c0_25, %c17_26] : memref<4x290xf32, #tpu.memory_space<vmem>>, vector<4x256xf32>
    %c1_27 = arith.constant 1 : index
    %c0_28 = arith.constant 0 : index
    %28 = vector.load %arg6[%c1_27, %c0_28] : memref<3x256xf32, #tpu.memory_space<vmem>>, vector<1x256xf32>
    %29 = vector.broadcast %28 : vector<1x256xf32> to vector<4x256xf32>
    %30 = arith.mulf %27, %29 : vector<4x256xf32>
    %c16_29 = arith.constant 16 : index
    %c0_30 = arith.constant 0 : index
    %31 = vector.load %arg9[%c16_29, %c0_30] : memref<36x256xf32, #tpu.memory_space<vmem>>, vector<4x256xf32>
    tpu.vector_store %arg9[%c16_29, %c0_30], %30 {strides = array<i32>} : memref<36x256xf32, #tpu.memory_space<vmem>>, vector<4x256xf32>,
    %c0_31 = arith.constant 0 : index
    %c18 = arith.constant 18 : index
    %32 = vector.load %arg8[%c0_31, %c18] : memref<4x290xf32, #tpu.memory_space<vmem>>, vector<4x256xf32>
    %c2_32 = arith.constant 2 : index
    %c0_33 = arith.constant 0 : index
    %33 = vector.load %arg6[%c2_32, %c0_33] : memref<3x256xf32, #tpu.memory_space<vmem>>, vector<1x256xf32>
    %34 = vector.broadcast %33 : vector<1x256xf32> to vector<4x256xf32>
    %35 = arith.mulf %32, %34 : vector<4x256xf32>
    %c20 = arith.constant 20 : index
    %c0_34 = arith.constant 0 : index
    %36 = vector.load %arg9[%c20, %c0_34] : memref<36x256xf32, #tpu.memory_space<vmem>>, vector<4x256xf32>
    tpu.vector_store %arg9[%c20, %c0_34], %35 {strides = array<i32>} : memref<36x256xf32, #tpu.memory_space<vmem>>, vector<4x256xf32>,
    %c0_35 = arith.constant 0 : index
    %c32 = arith.constant 32 : index
    %37 = vector.load %arg8[%c0_35, %c32] : memref<4x290xf32, #tpu.memory_space<vmem>>, vector<4x256xf32>
    %c0_36 = arith.constant 0 : index
    %c0_37 = arith.constant 0 : index
    %38 = vector.load %arg6[%c0_36, %c0_37] : memref<3x256xf32, #tpu.memory_space<vmem>>, vector<1x256xf32>
    %39 = vector.broadcast %38 : vector<1x256xf32> to vector<4x256xf32>
    %40 = arith.mulf %37, %39 : vector<4x256xf32>
    %c24 = arith.constant 24 : index
    %c0_38 = arith.constant 0 : index
    %41 = vector.load %arg9[%c24, %c0_38] : memref<36x256xf32, #tpu.memory_space<vmem>>, vector<4x256xf32>
    tpu.vector_store %arg9[%c24, %c0_38], %40 {strides = array<i32>} : memref<36x256xf32, #tpu.memory_space<vmem>>, vector<4x256xf32>,
    %c0_39 = arith.constant 0 : index
    %c33 = arith.constant 33 : index
    %42 = vector.load %arg8[%c0_39, %c33] : memref<4x290xf32, #tpu.memory_space<vmem>>, vector<4x256xf32>
    %c1_40 = arith.constant 1 : index
    %c0_41 = arith.constant 0 : index
    %43 = vector.load %arg6[%c1_40, %c0_41] : memref<3x256xf32, #tpu.memory_space<vmem>>, vector<1x256xf32>
    %44 = vector.broadcast %43 : vector<1x256xf32> to vector<4x256xf32>
    %45 = arith.mulf %42, %44 : vector<4x256xf32>
    %c28 = arith.constant 28 : index
    %c0_42 = arith.constant 0 : index
    %46 = vector.load %arg9[%c28, %c0_42] : memref<36x256xf32, #tpu.memory_space<vmem>>, vector<4x256xf32>
    tpu.vector_store %arg9[%c28, %c0_42], %45 {strides = array<i32>} : memref<36x256xf32, #tpu.memory_space<vmem>>, vector<4x256xf32>,
    %c0_43 = arith.constant 0 : index
    %c34 = arith.constant 34 : index
    %47 = vector.load %arg8[%c0_43, %c34] : memref<4x290xf32, #tpu.memory_space<vmem>>, vector<4x256xf32>
    %c2_44 = arith.constant 2 : index
    %c0_45 = arith.constant 0 : index
    %48 = vector.load %arg6[%c2_44, %c0_45] : memref<3x256xf32, #tpu.memory_space<vmem>>, vector<1x256xf32>
    %49 = vector.broadcast %48 : vector<1x256xf32> to vector<4x256xf32>
    %50 = arith.mulf %47, %49 : vector<4x256xf32>
    %c32_46 = arith.constant 32 : index
    %c0_47 = arith.constant 0 : index
    %51 = vector.load %arg9[%c32_46, %c0_47] : memref<36x256xf32, #tpu.memory_space<vmem>>, vector<4x256xf32>
    tpu.vector_store %arg9[%c32_46, %c0_47], %50 {strides = array<i32>} : memref<36x256xf32, #tpu.memory_space<vmem>>, vector<4x256xf32>,
    %c0_48 = arith.constant 0 : index
    %c0_49 = arith.constant 0 : index
    %52 = vector.load %arg3[%c0_48, %c0_49] : memref<16x36xf32, #tpu.memory_space<vmem>>, vector<16x36xf32>
    %c0_50 = arith.constant 0 : index
    %c0_51 = arith.constant 0 : index
    %53 = vector.load %arg9[%c0_50, %c0_51] : memref<36x256xf32, #tpu.memory_space<vmem>>, vector<36x256xf32>
    %cst_52 = arith.constant dense<0.000000e+00> : vector<16x256xf32>
    %54 = tpu.matmul %52, %53, %cst_52 {dimension_numbers = #tpu.dot_dimension_numbers<[1], [0], [0], [1], [0, 0, 1, 1], [], []>} : vector<16x36xf32>, vector<36x256xf32>, vector<16x256xf32> -> vector<16x256xf32>
    %c0_53 = arith.constant 0 : index
    %c0_54 = arith.constant 0 : index
    %55 = vector.load %arg4[%c0_53, %c0_54] : memref<16x8xf32, #tpu.memory_space<vmem>>, vector<16x8xf32>
    %c0_55 = arith.constant 0 : index
    %c0_56 = arith.constant 0 : index
    %c0_57 = arith.constant 0 : index
    %56 = vector.load %arg2[%c0_55, %c0_56, %c0_57] : memref<1x8x256xf32, #tpu.memory_space<vmem>>, vector<1x8x256xf32>
    %57 = vector.shape_cast %56 : vector<1x8x256xf32> to vector<8x256xf32>
    %cst_58 = arith.constant dense<0.000000e+00> : vector<16x256xf32>
    %58 = tpu.matmul %55, %57, %cst_58 {dimension_numbers = #tpu.dot_dimension_numbers<[1], [0], [0], [1], [0, 0, 1, 1], [], []>} : vector<16x8xf32>, vector<8x256xf32>, vector<16x256xf32> -> vector<16x256xf32>
    %59 = arith.addf %54, %58 : vector<16x256xf32>
    %c0_59 = arith.constant 0 : index
    %c0_60 = arith.constant 0 : index
    %60 = vector.load %arg5[%c0_59, %c0_60] : memref<16x1xf32, #tpu.memory_space<vmem>>, vector<16x1xf32>
    %61 = vector.broadcast %60 : vector<16x1xf32> to vector<16x256xf32>
    %62 = arith.addf %59, %61 : vector<16x256xf32>
    %c0_61 = arith.constant 0 : index
    %c0_62 = arith.constant 0 : index
    %c0_63 = arith.constant 0 : index
    %63 = vector.load %arg7[%c0_61, %c0_62, %c0_63] : memref<1x16x256xf32, #tpu.memory_space<vmem>>, vector<1x16x256xf32>
    %64 = vector.shape_cast %63 : vector<1x16x256xf32> to vector<16x256xf32>
    %65 = vector.shape_cast %62 : vector<16x256xf32> to vector<1x16x256xf32>
    tpu.vector_store %arg7[%c0_61, %c0_62, %c0_63], %65 {strides = array<i32>} : memref<1x16x256xf32, #tpu.memory_space<vmem>>, vector<1x16x256xf32>,
    return
  }
  func.func @transform_0(%arg0: i32) -> (i32, i32, i32) {
    %c0_i32 = arith.constant 0 : i32
    %c0_i32_0 = arith.constant 0 : i32
    %c0_i32_1 = arith.constant 0 : i32
    return %arg0, %c0_i32, %c0_i32_0 : i32, i32, i32
  }
  func.func @transform_1(%arg0: i32) -> (i32, i32, i32) {
    %c0_i32 = arith.constant 0 : i32
    %c0_i32_0 = arith.constant 0 : i32
    %c0_i32_1 = arith.constant 0 : i32
    return %arg0, %c0_i32, %c0_i32_0 : i32, i32, i32
  }
  func.func @transform_2(%arg0: i32) -> (i32, i32) {
    %c0_i32 = arith.constant 0 : i32
    %c0_i32_0 = arith.constant 0 : i32
    %c0_i32_1 = arith.constant 0 : i32
    return %c0_i32, %c0_i32_0 : i32, i32
  }
  func.func @transform_3(%arg0: i32) -> (i32, i32) {
    %c0_i32 = arith.constant 0 : i32
    %c0_i32_0 = arith.constant 0 : i32
    %c0_i32_1 = arith.constant 0 : i32
    return %c0_i32, %c0_i32_0 : i32, i32
  }
  func.func @transform_4(%arg0: i32) -> (i32, i32) {
    %c0_i32 = arith.constant 0 : i32
    %c0_i32_0 = arith.constant 0 : i32
    %c0_i32_1 = arith.constant 0 : i32
    return %c0_i32, %c0_i32_0 : i32, i32
  }
  func.func @transform_5(%arg0: i32) -> (i32, i32) {
    %c0_i32 = arith.constant 0 : i32
    %c0_i32_0 = arith.constant 0 : i32
    %c0_i32_1 = arith.constant 0 : i32
    return %c0_i32, %c0_i32_0 : i32, i32
  }
  func.func @transform_6(%arg0: i32) -> (i32, i32, i32) {
    %c0_i32 = arith.constant 0 : i32
    %c0_i32_0 = arith.constant 0 : i32
    %c0_i32_1 = arith.constant 0 : i32
    return %arg0, %c0_i32, %c0_i32_0 : i32, i32, i32
  }
}

</mosaic_0001>

<bundles_post_ra>
// kernel: conditional_conv2d.1
= control target key start
LH: loop header
LB: loop body
LE: loop exit
PB: predicated region body
PF: predicated region fallthrough
CT: control target
= control target key end

     0   :  { %s1031_s21 = smov 0   ;;  %s1173_s0 = inlined_call_operand.vmem [shape: f32[2,4,256], index: 0, kind: input, shape index: {}]   ;;  %s1174_s1 = inlined_call_operand.vmem [shape: f32[2,8,256], index: 1, kind: input, shape index: {}]   ;;  %s1175_s2 = inlined_call_operand.vmem [shape: f32[16,36], index: 2, kind: input, shape index: {}]   ;;  %s1176_s3 = inlined_call_operand.vmem [shape: f32[16,8], index: 3, kind: input, shape index: {}]   ;;  %s1177_s4 = inlined_call_operand.vmem [shape: f32[16,1], index: 4, kind: input, shape index: {}]   ;;  %s1178_s5 = inlined_call_operand.vmem [shape: f32[3,256], index: 5, kind: input, shape index: {}]   ;;  %s1179_s6 = inlined_call_operand.vmem [shape: f32[2,16,256], index: 6, kind: output, shape index: {}]  }
   0x1 LB: > { %s896_s22 = sadd.s32 4294967295, %s976_s21   ;;  %p900_p0 = scmp.ge.s32.totalorder %s976_s21, 1  ;;  %s976_s21 = sphi %s1031_s21, %s16_s21  }
   0x2   : > { %p222_p1 = scmp.lt.s32.totalorder %s976_s21, 3 }
   0x4   : > { %p223_p2 = pnand %p900_p0, %p222_p1 }
   0x5   : > { %p257_p3 = scmp.lt.s32.totalorder (!%p223_p2), %s896_s22, 1  ;;  %v293_v0 = vlaneseq (!%p223_p2)  ;;  %vm272_vm0 = vcmask (!%p223_p2), 134144   ;;  %v907_v2 = vld [vmem:[%s1178_s5 + $0x1] ss:$4 sm:$0x3] (!%p223_p2)  ;;  %v978_v3 = vmov (!%p223_p2), 0.0  }
   0x6   : > { %226 = sbr.rel (%p223_p2) target bundleno = 534 (0x216), region = 44  ;;  %273 = vst.msk [vmem:[#allocation2] sm:$0xf] (!%p223_p2), %vm272_vm0, %v978_v3  ;;  %vm274_vm1 = vcmask (!%p223_p2), 273544   ;;  %705 = vmatprep.mubr.f32.mxu0 (!%p223_p2), %v978_v3  ;;  %802 = vmatprep.mubr.f32.mxu1 (!%p223_p2), %v978_v3  ;;  %s979_s11 = smov (!%p223_p2), 17   ;;  %vm285_vm2 = vcmask (!%p223_p2), 1043592  }
   0x7   : > { %v294_v1 = vshrl.u32 (!%p223_p2), %v293_v0, 7  ;;  %v908_v4 = vld [vmem:[%s1178_s5 + $0x2] ss:$4 sm:$0x3] (!%p223_p2)  ;;  %275 = vst.msk [vmem:[#allocation2 + $0x8] sm:$0xf] (!%p223_p2), %vm274_vm1, %v978_v3 }
   0x8   : > { %v390_v5 = vld [vmem:[%s1178_s5] ss:$4 sm:$0x3] (!%p223_p2)  ;;  %v909_v8 = vld [vmem:[%s1178_s5 + $0x1] ss:$4 sm:$0x3] (!%p223_p2) }
   0x9   : > { %v295_v6 = vsub.s32 (!%p223_p2), 0, %v294_v1  ;;  %v299_v7 = vsub.s32 (!%p223_p2), 1, %v294_v1  ;;  %v505_v18 = vld [vmem:[%s1178_s5] ss:$4 sm:$0x3] (!%p223_p2)  ;;  %s980_s18 = smov (!%p223_p2), 1  }
   0xa   : > { %v910_v21 = vld [vmem:[%s1178_s5 + $0x2] ss:$4 sm:$0x3] (!%p223_p2)  ;;  %v291_v22 = vld [vmem:[%s1178_s5] ss:$4 sm:$0x3] (!%p223_p2) }
   0xb   : > { %v317_v10 = vrot.slane (!%p223_p2), %v907_v2, %v295_v6  ;;  %v321_v11 = vrot.slane (!%p223_p2), %v907_v2, %v299_v7  ;;  %v357_v12 = vrot.slane (!%p223_p2), %v908_v4, %v295_v6  ;;  %v361_v13 = vrot.slane (!%p223_p2), %v908_v4, %v299_v7  ;;  %s981_s19 = smov (!%p223_p2), 2   ;;  %v911_v29 = vld [vmem:[%s1178_s5 + $0x1] ss:$4 sm:$0x3] (!%p223_p2)  ;;  %s982_s26 = smov (!%p223_p2), 16  }
   0xc   : > { %v395_v14 = vrot.slane (!%p223_p2), %v390_v5, %v295_v6  ;;  %v399_v15 = vrot.slane (!%p223_p2), %v390_v5, %v299_v7  ;;  %v434_v16 = vrot.slane (!%p223_p2), %v909_v8, %v295_v6  ;;  %v438_v17 = vrot.slane (!%p223_p2), %v909_v8, %v299_v7  ;;  %v912_v32 = vld [vmem:[%s1178_s5 + $0x2] ss:$4 sm:$0x3] (!%p223_p2)  ;;  %s983_s27 = smov (!%p223_p2), 32   ;;  %s984_s28 = smov (!%p223_p2), 18  }
   0xd   : > { %s1181_s22 = smov (!%p257_p3, %s896_s22), 1  ;;  %v322_v19 = vcombine.low %v317_v10, %v321_v11  ;;  %v362_v20 = vcombine.low %v357_v12, %v361_v13  ;;  %v510_v25 = vrot.slane %v505_v18, %v295_v6  ;;  %v514_v26 = vrot.slane %v505_v18, %v299_v7  ;;  %s986_s30 = smov 34  }
   0xe   : > { %s921_s29 = sshll.u32 %s1181_s22, 3  ;;  %v400_v23 = vcombine.low %v395_v14, %v399_v15  ;;  %v439_v24 = vcombine.low %v434_v16, %v438_v17  ;;  %v471_v27 = vrot.slane %v910_v21, %v295_v6  ;;  %v475_v28 = vrot.slane %v910_v21, %v299_v7  ;;  %s987_s7 = smov 126  }
   0xf   : > { %s261_s10 = scalar_lea.vmem %s1173_s0, %s921_s29  ;;  %323 = vrot.lane.b32.xlu1 %v322_v19, %s980_s18  ;;  %v296_v30 = vrot.slane %v291_v22, %v295_v6  ;;  %v300_v31 = vrot.slane %v291_v22, %v299_v7  ;;  %v515_v34 = vcombine.low %v510_v25, %v514_v26  ;;  %v548_v35 = vrot.slane %v911_v29, %v295_v6  ;;  %s985_s29 = smov 33  }
  0x10   : > { %v276_v9 = vld [vmem:[%s261_s10] sm:$0xff]  ;;  %v552_v36 = vrot.slane %v911_v29, %v299_v7  ;;  %v476_v37 = vcombine.low %v471_v27, %v475_v28  ;;  %v587_v38 = vrot.slane %v912_v32, %v295_v6  ;;  %v591_v39 = vrot.slane %v912_v32, %v299_v7  ;;  %s988_s8 = smov 111   ;;  %s989_s9 = smov 96  }
  0x11   : > { %278 = vrot.lane.b32.xlu0 %v276_v9, %s979_s11  ;;  %v301_v33 = vcombine.low %v296_v30, %v300_v31  ;;  %vm286_vm3 = vcmask 1047556   ;;  %vm281_vm4 = vcmask 138240   ;;  %vm366_vm6 = vcmask 15360   ;;  %s990_s10 = smov 110   ;;  %s992_s12 = smov 95  }
  0x12   : > { %v553_v40 = vcombine.low %v548_v35, %v552_v36  ;;  %v592_v41 = vcombine.low %v587_v38, %v591_v39  ;;  %vm287_vm5 = vmor %vm286_vm3, %vm285_vm2  ;;  %vm480_vm7 = vcmask 146432   ;;  %vm326_vm8 = vcmask 7168   ;;  %s993_s13 = smov 112   ;;  %s922_s14 = sshll.u32 %s1181_s22, 4  ;;  %v630_v38 = vld [vmem:[%s1176_s3] sm:$0xff] }
  0x13   : > { %401 = vrot.lane.b32.xlu1 %v400_v23, %s982_s26  ;;  %vm557_vm9 = vcmask 269312   ;;  %vm404_vm10 = vcmask 130048   ;;  %vm519_vm11 = vcmask 261120   ;;  %s266_s17 = scalar_lea.vmem %s1174_s1, %s922_s14  ;;  %vm596_vm12 = vcmask 277504   ;;  %s994_s20 = smov 94  }
  0x14   : > { %vm634_vm13 = vcmask 64512   ;;  %vm496_vm14 = vcmask 900096   ;;  %vm573_vm15 = vcmask 777216   ;;  %vm381_vm1 = vcmask 1031168  }
  0x15   : > { %363 = vrot.lane.b32.xlu0 %v362_v20, %s981_s19  ;;  %vm420_vm2 = vcmask 916480   ;;  %vm457_vm3 = vcmask 908288  }
  0x17   : > { %516 = vrot.lane.b32.xlu1 %v515_v34, %s983_s27  ;;  %v632_v34 = vld [vmem:[%s266_s17] sm:$0xff] }
  0x19   : > { %440 = vrot.lane.b32.xlu0 %v439_v24, %s979_s11  ;;  %s991_s11 = smov 127  }
  0x1b   : > { %554 = vrot.lane.b32.xlu1 %v553_v40, %s985_s29 }
  0x1d   : > { %477 = vrot.lane.b32.xlu0 %v476_v37, %s984_s28 }
  0x21   : > { %593 = vrot.lane.b32.xlu0 %v592_v41, %s986_s30 }
  0x81   : > { %v1081_v45 = vpop.permute.xlu1 %323 }
  0x82   : > { %v325_v2 = vrot.slane %v1081_v45, 4 }
  0x83   : > { %v279_v42 = vpop.permute.xlu0 %278 }
  0x84   : > { %v280_v43 = vrot.slane %v279_v42, 4  ;;  %v327_v8 = vsel %vm326_vm8, %v325_v2, %v1081_v45 }
  0x85   : > { %v1083_v47 = vpop.permute.xlu1 %401 }
  0x86   : > { %v282_v44 = vsel %vm281_vm4, %v280_v43, %v279_v42  ;;  %289 = vst.msk [vmem:[#allocation2 + $0x8] sm:$0xf] %vm272_vm0, %v280_v43  ;;  %v403_v6 = vrot.slane %v1083_v47, 4  ;;  %vm342_vm0 = vcmask 1039360  }
  0x87   : > { %288 = vst.msk [vmem:[#allocation2] sm:$0xff] %vm287_vm5, %v282_v44  ;;  %v364_v46 = vpop.permute.xlu0 %363  ;;  %vm611_vm5 = vcmask 769024  }
  0x88   : > { %v365_v49 = vrot.slane %v364_v46, 4  ;;  %v405_v12 = vsel %vm404_vm10, %v403_v6, %v1083_v47 }
  0x89   : > { %v517_v55 = vpop.permute.xlu1 %516 }
  0x8a   : > { %v518_v59 = vrot.slane %v517_v55, 4  ;;  %v367_v61 = vsel %vm366_vm6, %v365_v49, %v364_v46  ;;  %v631_v46 = vld [vmem:[%s1176_s3 + $0x8] sm:$0xff]  ;;  %vm725_vm6 = vcmask 1043456  }
  0x8b   : > { %v441_v48 = vpop.permute.xlu0 %440 }
  0x8c   : > { %v442_v50 = vrot.slane %v441_v48, 4  ;;  %v520_v20 = vsel %vm519_vm11, %v518_v59, %v517_v55 }
  0x8d   : > { %v350_v51 = vld [vmem:[#allocation2 + $0x8] sm:$0xf]  ;;  %v555_v1 = vpop.permute.xlu1 %554 }
  0x8e   : > { %v1085_v52 = vld [vmem:[#allocation2] sm:$0xff]  ;;  %v371_v53 = vmul.f32 %v365_v49, %v350_v51  ;;  %v428_v54 = vld [vmem:[#allocation2 + $0x8] sm:$0xf]  ;;  %v556_v5 = vrot.slane %v555_v1, 4  ;;  %v443_v14 = vsel %vm281_vm4, %v442_v50, %v441_v48  ;;  %vm534_vm4 = vcmask 785408  }
  0x8f   : > { %v303_v56 = vmul.f32 %v301_v33, %v1085_v52  ;;  %v478_v57 = vpop.permute.xlu0 %477  ;;  %v447_v58 = vmul.f32 %v442_v50, %v428_v54  ;;  %v504_v62 = vld [vmem:[#allocation2 + $0x8] sm:$0xf]  ;;  %v370_v63 = vmul.f32 %v367_v61, %v1085_v52  ;;  %v330_v11 = vmul.f32 %v327_v8, %v1085_v52  ;;  %v809_v51 = vld [vmem:[%s1177_s4] sm:$0xff] }
  0x90   : > { %v479_v60 = vrot.slane %v478_v57, 4  ;;  %379 = vrot.lane.b32.xlu0 %v371_v53, %s987_s7  ;;  %v524_v0 = vmul.f32 %v518_v59, %v504_v62  ;;  %v558_v9 = vsel %vm557_vm9, %v556_v5, %v555_v1  ;;  %v465_v15 = vld [vmem:[#allocation2 + $0x8] sm:$0xf]  ;;  %v408_v16 = vmul.f32 %v405_v12, %v1085_v52 }
  0x91   : > { %307 = vst [vmem:[#allocation3] sm:$0xf] %v303_v56  ;;  %455 = vrot.lane.b32.xlu1 %v447_v58, %s988_s8  ;;  %v305_v10 = vcombine.high %v303_v56, %v303_v56  ;;  %v1104_v13 = vmul.f32 %v558_v9, %v1085_v52  ;;  %v446_v18 = vmul.f32 %v443_v14, %v1085_v52  ;;  %v310_v19 = vld [vmem:[#allocation2 + $0x8] sm:$0xf]  ;;  %v995_v50 = vmov 0  }
  0x92   : > { %v481_v4 = vsel %vm480_vm7, %v479_v60, %v478_v57  ;;  %v485_v17 = vmul.f32 %v479_v60, %v465_v15  ;;  %v542_v21 = vld [vmem:[#allocation2 + $0x8] sm:$0xf]  ;;  %v331_v24 = vmul.f32 %v325_v2, %v310_v19  ;;  %v523_v25 = vmul.f32 %v520_v20, %v1085_v52  ;;  %969 = vset.pattern.permute.xlu0 %v995_v50 }
  0x93   : > { %v1095_v7 = vmul.f32 %v481_v4, %v1085_v52  ;;  %308 = vst [vmem:[#allocation3 + $0x8] sm:$0xf] %v305_v10  ;;  %v562_v22 = vmul.f32 %v556_v5, %v542_v21  ;;  %v389_v26 = vld [vmem:[#allocation2 + $0x8] sm:$0xf]  ;;  %v594_v30 = vpop.permute.xlu0 %593  ;;  %v374_v31 = vcombine.high %v370_v63, %v370_v63  ;;  %v334_v36 = vcombine.low %v330_v11, %v330_v11 }
  0x94   : > { %375 = vrot.lane.b32.xlu0 %v370_v63, %s987_s7  ;;  %v489_v23 = vcombine.low %v485_v17, %v485_v17  ;;  %v409_v28 = vmul.f32 %v403_v6, %v389_v26  ;;  %v335_v29 = vcombine.low %v331_v24, %v331_v24  ;;  %v633_v33 = vld [vmem:[%s266_s17 + $0x8] sm:$0xff]  ;;  %v595_v35 = vrot.slane %v594_v30, 4  ;;  %968 = vset.pattern.permute.xlu1 %v995_v50 }
  0x95   : > { %532 = vrot.lane.b32.xlu1 %v524_v0, %s989_s9  ;;  %v566_v27 = vcombine.low %v562_v22, %v562_v22  ;;  %641 = vmatprep.subr.mxu0 %v633_v33  ;;  %v450_v37 = vcombine.high %v446_v18, %v446_v18  ;;  %v412_v40 = vcombine.low %v408_v16, %v408_v16  ;;  %v581_v47 = vld [vmem:[#allocation2 + $0x8] sm:$0xf]  ;;  %vm718_vm7 = vcmask 293888  }
  0x96   : > { %v413_v32 = vcombine.low %v409_v28, %v409_v28  ;;  %642 = vmatpush1.msra.mxu0 %v632_v34  ;;  %v597_v39 = vsel %vm596_vm12, %v595_v35, %v594_v30  ;;  %v527_v42 = vcombine.high %v523_v25, %v523_v25  ;;  %v488_v43 = vcombine.low %v1095_v7, %v1095_v7  ;;  %v810_v49 = vld [vmem:[%s1177_s4 + $0x8] sm:$0xff] }
  0x97   : > { %913 = vmatmul.mubr.msk.f32.vlgmr.msra.gmra.mrb[0].mxu0 %vm634_vm13, %v630_v38  ;;  %v600_v41 = vmul.f32 %v597_v39, %v1085_v52  ;;  %v565_v45 = vcombine.low %v1104_v13, %v1104_v13  ;;  %v601_v48 = vmul.f32 %v595_v35, %v581_v47 }
  0x98   : > { %492 = vrot.lane.b32.xlu0 %v1095_v7, %s990_s10  ;;  %711 = vmatprep.mubr.f32.mxu0 %v978_v3 }
  0x99   : > { %338 = vrot.lane.b32.xlu1 %v330_v11, %s991_s11  ;;  %v604_v44 = vcombine.high %v600_v41, %v600_v41 }
  0x9b   : > { %914 = vmatmul.mubr.msk.f32.gmra.mrb[2].mxu0 %vm634_vm13, %v631_v46 }
  0x9c   : > { %569 = vrot.lane.b32.xlu0 %v1104_v13, %s992_s12  ;;  %796 = vmatprep.mubr.f32.mxu0 %v978_v3 }
  0x9d   : > { %416 = vrot.lane.b32.xlu1 %v408_v16, %s993_s13 }
  0xa0   : > { %451 = vrot.lane.b32.xlu0 %v446_v18, %s988_s8 }
  0xa1   : > { %494 = vrot.lane.b32.xlu1 %v489_v23, %s990_s10 }
  0xa4   : > { %528 = vrot.lane.b32.xlu0 %v523_v25, %s989_s9 }
  0xa5   : > { %571 = vrot.lane.b32.xlu1 %v566_v27, %s992_s12 }
  0xa8   : > { %340 = vrot.lane.b32.xlu0 %v335_v29, %s991_s11 }
  0xa9   : > { %377 = vrot.lane.b32.xlu1 %v374_v31, %s987_s7 }
  0xac   : > { %418 = vrot.lane.b32.xlu0 %v413_v32, %s993_s13 }
  0xad   : > { %336 = vrot.lane.b32.xlu1 %v334_v36, %s991_s11 }
  0xb0   : > { %453 = vrot.lane.b32.xlu0 %v450_v37, %s988_s8 }
  0xb1   : > { %414 = vrot.lane.b32.xlu1 %v412_v40, %s993_s13 }
  0xb4   : > { %530 = vrot.lane.b32.xlu0 %v527_v42, %s989_s9  ;;  %v619_v42 = vld [vmem:[%s1175_s2 + $0x8] sm:$0xff]  ;;  %s923_s9 = sshll.u32 %s1181_s22, 5 }
  0xb5   : > { %490 = vrot.lane.b32.xlu1 %v488_v43, %s990_s10 }
  0xb8   : > { %607 = vrot.lane.b32.xlu0 %v604_v44, %s994_s20 }
  0xb9   : > { %567 = vrot.lane.b32.xlu1 %v565_v45, %s992_s12  ;;  %s271_s12 = scalar_lea.vmem %s1179_s6, %s923_s9 }
  0xbc   : > { %605 = vrot.lane.b32.xlu0 %v600_v41, %s994_s20  ;;  %v618_v41 = vld [vmem:[%s1175_s2] sm:$0xff] }
  0xbd   : > { %609 = vrot.lane.b32.xlu1 %v601_v48, %s994_s20 }
  0xc0   : > { %818 = vperm.xlu0 %969, %v810_v49  }
  0xc1   : > { %813 = vperm.xlu1 %968, %v809_v51  }
 0x102   : > { %v380_v52 = vpop.permute.xlu0 %379 }
 0x103   : > { %v456_v53 = vpop.permute.xlu1 %455 }
 0x106   : > { %v376_v3 = vpop.permute.xlu0 %375 }
 0x107   : > { %v533_v54 = vpop.permute.xlu1 %532 }
 0x10a   : > { %v493_v55 = vpop.permute.xlu0 %492 }
 0x10b   : > { %v339_v56 = vpop.permute.xlu1 %338 }
 0x10e   : > { %v570_v57 = vpop.permute.xlu0 %569 }
 0x10f   : > { %v417_v58 = vpop.permute.xlu1 %416 }
 0x112   : > { %v452_v59 = vpop.permute.xlu0 %451 }
 0x113   : > { %v495_v60 = vpop.permute.xlu1 %494 }
 0x114   : > { %v498_v61 = vsel %vm496_vm14, %v493_v55, %v495_v60 }
 0x115   : > { %502 = vst [vmem:[#allocation3 + $0x28] sm:$0xf0] %v498_v61 }
 0x116   : > { %v529_v62 = vpop.permute.xlu0 %528 }
 0x117   : > { %v572_v63 = vpop.permute.xlu1 %571 }
 0x118   : > { %v575_v0 = vsel %vm573_vm15, %v570_v57, %v572_v63 }
 0x119   : > { %579 = vst [vmem:[#allocation3 + $0x38] sm:$0xf0] %v575_v0 }
 0x11a   : > { %v341_v1 = vpop.permute.xlu0 %340 }
 0x11b   : > { %v344_v2 = vsel %vm342_vm0, %v339_v56, %v341_v1  ;;  %v378_v4 = vpop.permute.xlu1 %377 }
 0x11c   : > { %348 = vst [vmem:[#allocation3 + $0x8] sm:$0xf0] %v344_v2  ;;  %v382_v5 = vsel %vm381_vm1, %v376_v3, %v378_v4  ;;  %v383_v6 = vsel %vm381_vm1, %v378_v4, %v380_v52 }
 0x11d   : > { %386 = vst [vmem:[#allocation3 + $0x10] sm:$0xf] %v382_v5  ;;  %387 = vst [vmem:[#allocation3 + $0x18] sm:$0xf] %v383_v6 }
 0x11e   : > { %v419_v7 = vpop.permute.xlu0 %418 }
 0x11f   : > { %v422_v8 = vsel %vm420_vm2, %v417_v58, %v419_v7  ;;  %v337_v9 = vpop.permute.xlu1 %336 }
 0x120   : > { %426 = vst [vmem:[#allocation3 + $0x18] sm:$0xf0] %v422_v8  ;;  %v343_v10 = vsel %vm342_vm0, %v337_v9, %v339_v56 }
 0x121   : > { %347 = vst [vmem:[#allocation3] sm:$0xf0] %v343_v10 }
 0x122   : > { %v454_v11 = vpop.permute.xlu0 %453 }
 0x123   : > { %v458_v12 = vsel %vm457_vm3, %v452_v59, %v454_v11  ;;  %v459_v13 = vsel %vm457_vm3, %v454_v11, %v456_v53  ;;  %v415_v14 = vpop.permute.xlu1 %414  ;;  %v621_v19 = vld [vmem:[#allocation3 + $0x8] sm:$0xff] }
 0x124   : > { %462 = vst [vmem:[#allocation3 + $0x20] sm:$0xf] %v458_v12  ;;  %463 = vst [vmem:[#allocation3 + $0x28] sm:$0xf] %v459_v13  ;;  %v421_v15 = vsel %vm420_vm2, %v415_v14, %v417_v58 }
 0x125   : > { %425 = vst [vmem:[#allocation3 + $0x10] sm:$0xf0] %v421_v15 }
 0x126   : > { %v531_v16 = vpop.permute.xlu0 %530 }
 0x127   : > { %v535_v17 = vsel %vm534_vm4, %v529_v62, %v531_v16  ;;  %v536_v18 = vsel %vm534_vm4, %v531_v16, %v533_v54  ;;  %v623_v20 = vld [vmem:[#allocation3 + $0x18] sm:$0xff]  ;;  %v491_v21 = vpop.permute.xlu1 %490 }
 0x128   : > { %539 = vst [vmem:[#allocation3 + $0x30] sm:$0xf] %v535_v17  ;;  %540 = vst [vmem:[#allocation3 + $0x38] sm:$0xf] %v536_v18  ;;  %v924_v22 = vpack.c.bf16 %v623_v20, %v621_v19  ;;  %v497_v23 = vsel %vm496_vm14, %v491_v21, %v493_v55  ;;  %v620_v27 = vld [vmem:[#allocation3] sm:$0xff] }
 0x129   : > { %501 = vst [vmem:[#allocation3 + $0x20] sm:$0xf0] %v497_v23 }
 0x12a   : > { %925 = vmatprep.subr.bf16.mxu0 %v924_v22  ;;  %932 = vmatprep.subr.bf16.mxu1 %v924_v22  ;;  %v608_v24 = vpop.permute.xlu0 %607 }
 0x12b   : > { %v568_v25 = vpop.permute.xlu1 %567  ;;  %v625_v32 = vld [vmem:[#allocation3 + $0x28] sm:$0xff] }
 0x12c   : > { %v574_v26 = vsel %vm573_vm15, %v568_v25, %v570_v57  ;;  %v622_v28 = vld [vmem:[#allocation3 + $0x10] sm:$0xff] }
 0x12d   : > { %578 = vst [vmem:[#allocation3 + $0x30] sm:$0xf0] %v574_v26  ;;  %v926_v29 = vpack.c.bf16 %v622_v28, %v620_v27 }
 0x12e   : > { %v606_v30 = vpop.permute.xlu0 %605 }
 0x12f   : > { %v612_v31 = vsel %vm611_vm5, %v606_v30, %v608_v24  ;;  %v627_v33 = vld [vmem:[#allocation3 + $0x38] sm:$0xff]  ;;  %v610_v34 = vpop.permute.xlu1 %609  ;;  %927 = vmatpush1.bf16.msra.mxu0 %v926_v29  ;;  %935 = vmatpush1.bf16.msra.mxu1 %v926_v29 }
 0x130   : > { %616 = vst [vmem:[#allocation3 + $0x40] sm:$0xf] %v612_v31  ;;  %v928_v35 = vpack.c.bf16 %v627_v33, %v625_v32  ;;  %v613_v36 = vsel %vm611_vm5, %v608_v24, %v610_v34  ;;  %v624_v37 = vld [vmem:[#allocation3 + $0x20] sm:$0xff] }
 0x131   : > { %617 = vst [vmem:[#allocation3 + $0x48] sm:$0xf] %v613_v36 }
 0x132   : > { %929 = vmatprep.subr.bf16.mxu0 %v928_v35  ;;  %933 = vmatprep.subr.bf16.mxu1 %v928_v35 }
 0x134   : > { %v626_v38 = vld [vmem:[#allocation3 + $0x30] sm:$0xff] }
 0x135   : > { %v930_v39 = vpack.c.bf16 %v626_v38, %v624_v37 }
 0x137   : > { %931 = vmatpush1.bf16.msra.mxu0 %v930_v39  ;;  %936 = vmatpush1.bf16.msra.mxu1 %v930_v39  ;;  %v628_v43 = vld [vmem:[#allocation3 + $0x40] sm:$0xf] }
 0x138   : > { %v629_v40 = vld [vmem:[#allocation3 + $0x48] sm:$0xf] }
 0x139   : > { %915 = vmatprep.subr.msk.mxu0 %vm725_vm6, %v629_v40  ;;  %934 = vmatprep.subr.msk.mxu1 %vm725_vm6, %v629_v40 }
 0x13b   : > { %916 = vmatpush1.msk.msra.mxu0 %vm725_vm6, %v628_v43  ;;  %937 = vmatpush1.msk.msra.mxu1 %vm725_vm6, %v628_v43 }
 0x13c   : > { %917 = vmatmul.mubr.msk.f32.vlgmr.msra.gmra.mrb[0].mxu0 %vm718_vm7, %v618_v41  ;;  %918 = vmatmul.mubr.msk.f32.vlgmr.msra.gmra.mrb[0].mxu1 %vm718_vm7, %v619_v42 }
 0x13f   : > { %v819_v47 = vpop.permute.xlu0 %818 }
 0x140   : > { %v814_v46 = vpop.permute.xlu1 %813 }
 0x16e   : > { %v713_v44 = vpop.f32.mrb[2].mxu0 }
 0x16f   : > { %v715_v45 = vpop.f32.mrb[3].mxu0 }
 0x20f   : > { %v798_v48 = vpop.f32.mrb[0].mxu0  ;;  %v804_v49 = vpop.f32.mrb[0].mxu1 }
 0x210   : > { %v821_v50 = vadd.f32 %v814_v46, %v798_v48  ;;  %v805_v51 = vadd.f32 %v804_v49, %v713_v44  ;;  %v800_v52 = vpop.f32.mrb[1].mxu0  ;;  %v806_v53 = vpop.f32.mrb[1].mxu1 }
 0x211   : > { %v822_v3 = vadd.f32 %v814_v46, %v800_v52  ;;  %v807_v54 = vadd.f32 %v806_v53, %v715_v45 }
 0x212   : > { %825 = vst [vmem:[%s271_s12] sm:$0xff] %v821_v50  ;;  %v823_v55 = vadd.f32 %v819_v47, %v805_v51 }
 0x213   : > { %826 = vst [vmem:[%s271_s12 + $0x8] sm:$0xff] %v822_v3  ;;  %v824_v56 = vadd.f32 %v819_v47, %v807_v54 }
 0x214   : > { %827 = vst [vmem:[%s271_s12 + $0x10] sm:$0xff] %v823_v55 }
 0x215   : > { %828 = vst [vmem:[%s271_s12 + $0x18] sm:$0xff] %v824_v56 }
 0x216 PF: > { %s16_s21 = sadd.s32 1, %s976_s21  }
 0x217   : > { %p13_p4 = scmp.ge.s32.totalorder %s16_s21, 4  }
 0x219   :  { %15 = sbr.rel (!%p13_p4) target bundleno = 1 (0x1), region = 79 }

</bundles_post_ra>
